<compile_context>
chip_gen: v5e
topology: v5e:2x2
jax: 0.10.0
libtpu: 0.0.40
codegen_flags: <defaults>
</compile_context>

<pallas_src>
import functools

import jax
import jax.numpy as jnp
from jax import lax
from jax.experimental import pallas as pl
from jax.experimental.pallas import tpu as pltpu


_GATHER_UNROLL = 8


def _round_up(x, m):
    return ((x + m - 1) // m) * m


def _accumulate(feat_ref, gather_buf, acc_ref, out_ref, g, t,
                *, batch, tb, num_tiles, tiles_per_core):
    """Shared tail: squared-error accumulate into the wide f32 scratch and, on
    the last tile of this core's segment, reduce + store the partial sum."""
    diff = feat_ref[...].astype(jnp.float32) - gather_buf[...].astype(jnp.float32)
    sq = diff * diff

    last = num_tiles - 1
    rem = batch - last * tb          # valid rows in the (globally) last tile
    if rem == tb:                    # batch divides evenly: never any padded rows
        acc_ref[...] += sq
    else:
        # Only the globally-last tile contains padded/garbage rows; gate the
        # iota/compare/select so it does not run on every tile.
        @pl.when(g != last)
        def _():
            acc_ref[...] += sq

        @pl.when(g == last)
        def _():
            rows = lax.broadcasted_iota(jnp.int32, sq.shape, 0)
            acc_ref[...] += jnp.where(rows < rem, sq, 0.0)

    # One cross-lane/sublane reduction per core segment (not per tile).
    @pl.when(t == tiles_per_core - 1)
    def _():
        out_ref[...] = jnp.sum(acc_ref[...], axis=(0, 1),
                               keepdims=True).reshape(1, 1, 1)


def _center_loss_vmem_kernel(labels_ref,    # SMEM (num_tiles*tb,) int32 (prefetch)
                             feat_ref,      # VMEM (tb, D) pipelined feat tile
                             centers_hbm,   # ANY/HBM (C, D)
                             out_ref,       # VMEM (1, 1, 1) f32 per-core partial
                             centers_vmem,  # VMEM (C, D) persistent table cache
                             gather_buf,    # VMEM (tb, D) gathered center rows
                             acc_ref,       # VMEM (tb, D) f32 wide accumulator
                             dma_sem,       # DMA semaphore (1,)
                             *, batch, tb, num_tiles, tiles_per_core):
    c = pl.program_id(0)            # core-split index ("parallel")
    t = pl.program_id(1)            # batch-tile index within this core ("arbitrary")
    g = c * tiles_per_core + t      # global batch-tile index

    @pl.when(t == 0)
    def _():
        acc_ref[...] = jnp.zeros_like(acc_ref)
        # Bulk-copy the whole centers table HBM -> VMEM once per core segment.
        cp = pltpu.make_async_copy(centers_hbm, centers_vmem, dma_sem.at[0])
        cp.start()
        cp.wait()

    # Gather the tb referenced center rows with cheap VMEM dynamic-slice reads
    # (no per-row DMA descriptors).  Manually unrolled so the scalar address
    # math and the masked loads/stores can co-issue.
    u = _GATHER_UNROLL

    @pl.loop(0, tb // u)
    def _(grp):
        base = pl.multiple_of(grp * u, u)
        for off in range(u):
            r = base + off
            lbl = labels_ref[g * tb + r]
            gather_buf[pl.ds(r, 1), :] = centers_vmem[pl.ds(lbl, 1), :]

    _accumulate(feat_ref, gather_buf, acc_ref, out_ref, g, t,
                batch=batch, tb=tb, num_tiles=num_tiles,
                tiles_per_core=tiles_per_core)


def _center_loss_hbm_kernel(labels_ref, feat_ref, centers_hbm, out_ref,
                            gather_buf, acc_ref, dma_sem,
                            *, batch, tb, num_tiles, tiles_per_core):
    """Fallback when the centers table does not fit the VMEM budget."""
    c = pl.program_id(0)
    t = pl.program_id(1)
    g = c * tiles_per_core + t

    @pl.when(t == 0)
    def _():
        acc_ref[...] = jnp.zeros_like(acc_ref)

    u = _GATHER_UNROLL

    # Issue all tb per-row gather DMAs first (they proceed concurrently), ...
    @pl.loop(0, tb // u)
    def _(grp):
        base = pl.multiple_of(grp * u, u)
        for off in range(u):
            r = base + off
            lbl = labels_ref[g * tb + r]
            pltpu.make_async_copy(
                centers_hbm.at[pl.ds(lbl, 1), :],
                gather_buf.at[pl.ds(r, 1), :],
                dma_sem.at[0],
            ).start()

    # ... then wait on descriptors identical to the ones that were started.
    # All tb waits complete before gather_buf is read (required invariant: the
    # rows share one semaphore, so an individual wait does not pin one row).
    # TODO(synk): single slab-sized wait + double-buffered (prefetch-ahead)
    #             gather to take this latency off the critical path.
    @pl.loop(0, tb // u)
    def _(grp):
        base = pl.multiple_of(grp * u, u)
        for off in range(u):
            r = base + off
            lbl = labels_ref[g * tb + r]
            pltpu.make_async_copy(
                centers_hbm.at[pl.ds(lbl, 1), :],
                gather_buf.at[pl.ds(r, 1), :],
                dma_sem.at[0],
            ).wait()

    _accumulate(feat_ref, gather_buf, acc_ref, out_ref, g, t,
                batch=batch, tb=tb, num_tiles=num_tiles,
                tiles_per_core=tiles_per_core)


def center_loss(label, feat, centers, size_average=True, *,
                tile_b=None, vmem_centers_budget=16 * 2**20):
    """Pallas implementation of CenterLoss.forward.

    label   : (B,) integer array
    feat    : (B, ...) array, flattened to (B, feat_dim)
    centers : (num_classes, feat_dim) parameter
    """
    batch = feat.shape[0]
    feat2d = jnp.reshape(feat, (batch, -1))
    feat_dim = feat2d.shape[1]
    if feat_dim != centers.shape[1]:
        raise ValueError(
            "Center's dim: {0} should be equal to input feature's dim: {1}".format(
                centers.shape[1], feat_dim))
    num_classes = centers.shape[0]

    itemsize_f = jnp.dtype(feat2d.dtype).itemsize
    itemsize_c = jnp.dtype(centers.dtype).itemsize

    centers_bytes = num_classes * feat_dim * itemsize_c
    use_vmem_centers = centers_bytes <= vmem_centers_budget

    # Batch tile: round to the feat dtype's sublane multiple, go large to
    # amortize per-grid-step overhead, shrink to fit a VMEM budget.
    sub = max(8, 32 // itemsize_f)          # 8 f32, 16 bf16, 32 int8/fp8
    if tile_b is None:
        tile_b = 1024 if feat_dim <= 1024 else (512 if feat_dim <= 4096 else 256)
    tb = _round_up(min(tile_b, _round_up(batch, sub)), sub)

    def vmem_est(tb_):
        est = 2 * tb_ * feat_dim * itemsize_f      # feat tile (double-buffered)
        est += tb_ * feat_dim * itemsize_c         # gathered center rows
        est += tb_ * feat_dim * 4                  # f32 wide accumulator
        if use_vmem_centers:
            est += centers_bytes                   # persistent centers cache
        return est

    budget = 40 * 2**20
    while vmem_est(tb) > budget and tb > sub:
        tb = max(sub, _round_up(tb // 2, sub))

    num_tiles = -(-batch // tb)

    # 2-way core split (v7x TensorCores) when the tile count divides evenly;
    # on single-core chips the extra "parallel" axis just iterates serially.
    n_split = 2 if (num_tiles >= 2 and num_tiles % 2 == 0) else 1
    tiles_per_core = num_tiles // n_split

    # Only the (cheap, tiny) labels array is padded; padded labels point at
    # class 0 (valid reads) and the corresponding rows are masked in-kernel.
    labels = jnp.reshape(label, (-1,)).astype(jnp.int32)
    lab_len = num_tiles * tb
    if lab_len != batch:
        labels = jnp.pad(labels, (0, lab_len - batch))

    common = dict(batch=batch, tb=tb, num_tiles=num_tiles,
                  tiles_per_core=tiles_per_core)
    if use_vmem_centers:
        kernel = functools.partial(_center_loss_vmem_kernel, **common)
        scratch_shapes = [
            pltpu.VMEM((num_classes, feat_dim), centers.dtype),  # centers cache
            pltpu.VMEM((tb, feat_dim), centers.dtype),           # gathered rows
            pltpu.VMEM((tb, feat_dim), jnp.float32),              # accumulator
            pltpu.SemaphoreType.DMA((1,)),
        ]
    else:
        kernel = functools.partial(_center_loss_hbm_kernel, **common)
        scratch_shapes = [
            pltpu.VMEM((tb, feat_dim), centers.dtype),
            pltpu.VMEM((tb, feat_dim), jnp.float32),
            pltpu.SemaphoreType.DMA((1,)),
        ]

    grid_spec = pltpu.PrefetchScalarGridSpec(
        num_scalar_prefetch=1,
        grid=(n_split, tiles_per_core),
        in_specs=[
            # feat tile: full-extent (unpadded) last dim, partial last block
            # handled by the in-kernel row mask.
            pl.BlockSpec((tb, feat_dim),
                         lambda c, t, lbl, T=tiles_per_core: (c * T + t, 0)),
            pl.BlockSpec(memory_space=pl.ANY),   # centers stay in HBM
        ],
        # One resident (1,1,1) f32 partial-sum block per core-split index.
        out_specs=pl.BlockSpec((1, 1, 1), lambda c, t, lbl: (c, 0, 0)),
        scratch_shapes=scratch_shapes,
    )

    cost = pl.CostEstimate(
        flops=int(3 * batch * feat_dim),
        transcendentals=0,
        bytes_accessed=int(batch * feat_dim * itemsize_f
                           + (centers_bytes if use_vmem_centers
                              else batch * feat_dim * itemsize_c)
                           + 4 * n_split),
    )

    vmem_limit = int(min(max(vmem_est(tb) * 5 // 4 + (2 << 20), 32 * 2**20),
                         60 * 2**20))

    partials = pl.pallas_call(
        kernel,
        out_shape=jax.ShapeDtypeStruct((n_split, 1, 1), jnp.float32),
        grid_spec=grid_spec,
        compiler_params=pltpu.CompilerParams(
            dimension_semantics=("parallel", "arbitrary"),
            vmem_limit_bytes=vmem_limit,
        ),
        cost_estimate=cost,
    )(labels, feat2d, centers)

    denom = jnp.float32(batch if size_average else 1)
    return jnp.sum(partials) / 2.0 / denom


def _reference(label, feat, centers, size_average=True):
    batch = feat.shape[0]
    feat2d = jnp.reshape(feat, (batch, -1)).astype(jnp.float32)
    cb = centers.astype(jnp.float32)[label]
    denom = batch if size_average else 1
    return jnp.sum((feat2d - cb) ** 2) / 2.0 / denom


if __name__ == "__main__":
    key = jax.random.PRNGKey(0)

    def check(loss, ref, tag):
        assert jnp.allclose(loss, ref, rtol=1e-4, atol=1e-4), (tag, loss, ref)

    # --- test 1: shapes matching the module (feat flattened to feat_dim) ---
    k_f, k_l, k_c, key = jax.random.split(key, 4)
    centers = jax.random.normal(k_c, (16, 32), dtype=jnp.float32)
    feat = jax.random.normal(k_f, (8, 2, 4, 4), dtype=jnp.float32)   # flattens to 32
    label = jax.random.randint(k_l, (8,), 0, 16, dtype=jnp.int32)
    loss = jax.block_until_ready(center_loss(label, feat, centers, size_average=True))
    check(loss, _reference(label, feat, centers, True), "t1")

    # --- test 2: batch smaller than a sublane tile (partial-block masking) ---
    k_f, k_l, k_c, key = jax.random.split(key, 4)
    centers2 = jax.random.normal(k_c, (7, 32), dtype=jnp.float32)
    feat2 = jax.random.normal(k_f, (5, 32), dtype=jnp.float32)
    label2 = jax.random.randint(k_l, (5,), 0, 7, dtype=jnp.int32)
    loss2 = jax.block_until_ready(center_loss(label2, feat2, centers2, size_average=False))
    check(loss2, _reference(label2, feat2, centers2, False), "t2")

    # --- test 3: multi-tile, 2-way core split, partial last tile (VMEM path) ---
    k_f, k_l, k_c, key = jax.random.split(key, 4)
    centers3 = jax.random.normal(k_c, (13, 96), dtype=jnp.float32)
    feat3 = jax.random.normal(k_f, (60, 96), dtype=jnp.float32)
    label3 = jax.random.randint(k_l, (60,), 0, 13, dtype=jnp.int32)
    loss3 = jax.block_until_ready(
        center_loss(label3, feat3, centers3, size_average=True, tile_b=16))
    check(loss3, _reference(label3, feat3, centers3, True), "t3")

    # --- test 4: forced HBM-gather fallback path, bf16 feat, partial last tile ---
    k_f, k_l, k_c, key = jax.random.split(key, 4)
    centers4 = jax.random.normal(k_c, (9, 64), dtype=jnp.float32)
    feat4 = jax.random.normal(k_f, (56, 64), dtype=jnp.bfloat16)
    label4 = jax.random.randint(k_l, (56,), 0, 9, dtype=jnp.int32)
    loss4 = jax.block_until_ready(
        center_loss(label4, feat4, centers4, size_average=True,
                    tile_b=16, vmem_centers_budget=0))
    check(loss4, _reference(label4, feat4, centers4, True), "t4")

    print("KERNEL_OK")
</pallas_src>

<mosaic_0001>
module attributes {stable_mosaic.version = 11 : i64} {
  func.func @_center_loss_vmem_kernel(%arg0: i32, %arg1: i32, %arg2: memref<8xi32, #tpu.memory_space<smem>>, %arg3: memref<8x32xf32, #tpu.memory_space<vmem>>, %arg4: memref<16x32xf32, #tpu.memory_space<any>>, %arg5: memref<1x1x1xf32, #tpu.memory_space<vmem>>, %arg6: memref<16x32xf32, #tpu.memory_space<vmem>>, %arg7: memref<8x32xf32, #tpu.memory_space<vmem>>, %arg8: memref<8x32xf32, #tpu.memory_space<vmem>>, %arg9: memref<1x!tpu.dma_semaphore, #tpu.memory_space<semaphore_mem>>) attributes {dimension_semantics = [#tpu.dimension_semantics<parallel>, #tpu.dimension_semantics<arbitrary>], iteration_bounds = array<i64: 1, 1>, scalar_prefetch = 1 : i64, scratch_operands = 4 : i64, tpu.core_type = #tpu.core_type<tc>, window_params = [{transform_indices = @transform_0, window_bounds = array<i64: 8, 32>}, {}, {transform_indices = @transform_2, window_bounds = array<i64: 1, 1, 1>}]} {
    %c1_i32 = arith.constant 1 : i32
    %0 = arith.muli %arg0, %c1_i32 : i32
    %1 = arith.addi %0, %arg1 : i32
    %c0_i32 = arith.constant 0 : i32
    %2 = arith.cmpi eq, %arg1, %c0_i32 : i32
    %3 = arith.extui %2 : i1 to i32
    %c0_i32_0 = arith.constant 0 : i32
    %4 = arith.cmpi ne, %3, %c0_i32_0 : i32
    scf.if %4 {
      %cst = arith.constant 0.000000e+00 : f32
      %91 = vector.broadcast %cst : f32 to vector<8x32xf32>
      %c0_40 = arith.constant 0 : index
      %c0_41 = arith.constant 0 : index
      %92 = vector.load %arg8[%c0_40, %c0_41] : memref<8x32xf32, #tpu.memory_space<vmem>>, vector<8x32xf32>
      tpu.vector_store %arg8[%c0_40, %c0_41], %91 {strides = array<i32>} : memref<8x32xf32, #tpu.memory_space<vmem>>, vector<8x32xf32>,
      %c0_i32_42 = arith.constant 0 : i32
      %93 = tpu.memref_slice %arg9[%c0_i32_42] : memref<1x!tpu.dma_semaphore, #tpu.memory_space<semaphore_mem>> -> memref<1x!tpu.dma_semaphore, #tpu.memory_space<semaphore_mem>>
      %94 = tpu.memref_squeeze %93 : memref<1x!tpu.dma_semaphore, #tpu.memory_space<semaphore_mem>> -> memref<!tpu.dma_semaphore, #tpu.memory_space<semaphore_mem>>
      tpu.enqueue_dma source(%arg4 : memref<16x32xf32, #tpu.memory_space<any>>) target(%arg6 : memref<16x32xf32, #tpu.memory_space<vmem>>) target_semaphore(%94 : memref<!tpu.dma_semaphore, #tpu.memory_space<semaphore_mem>>)
      %c0_i32_43 = arith.constant 0 : i32
      %95 = tpu.memref_slice %arg9[%c0_i32_43] : memref<1x!tpu.dma_semaphore, #tpu.memory_space<semaphore_mem>> -> memref<1x!tpu.dma_semaphore, #tpu.memory_space<semaphore_mem>>
      %96 = tpu.memref_squeeze %95 : memref<1x!tpu.dma_semaphore, #tpu.memory_space<semaphore_mem>> -> memref<!tpu.dma_semaphore, #tpu.memory_space<semaphore_mem>>
      tpu.wait_dma2 semaphore(%96 : memref<!tpu.dma_semaphore, #tpu.memory_space<semaphore_mem>>) src(%arg4 : memref<16x32xf32, #tpu.memory_space<any>>) dst(%arg6 : memref<16x32xf32, #tpu.memory_space<vmem>>)
    } else {
    }
    %c0_i32_1 = arith.constant 0 : i32
    %c1_i32_2 = arith.constant 1 : i32
    %5 = arith.muli %c0_i32_1, %c1_i32_2 : i32
    %c0_i32_3 = arith.constant 0 : i32
    %6 = arith.addi %c0_i32_3, %5 : i32
    %c8_i32 = arith.constant 8 : i32
    %7 = arith.muli %6, %c8_i32 : i32
    %8 = tpu.assume_multiple %7, 8 : i32
    %c0_i32_4 = arith.constant 0 : i32
    %9 = arith.addi %8, %c0_i32_4 : i32
    %c8_i32_5 = arith.constant 8 : i32
    %10 = arith.muli %1, %c8_i32_5 : i32
    %11 = arith.addi %10, %9 : i32
    %12 = arith.index_cast %11 : i32 to index
    %13 = memref.load %arg2[%12] : memref<8xi32, #tpu.memory_space<smem>>
    %14 = arith.index_cast %13 : i32 to index
    %c0 = arith.constant 0 : index
    %15 = vector.load %arg6[%14, %c0] : memref<16x32xf32, #tpu.memory_space<vmem>>, vector<1x32xf32>
    %16 = arith.index_cast %9 : i32 to index
    %c0_6 = arith.constant 0 : index
    %17 = vector.load %arg7[%16, %c0_6] : memref<8x32xf32, #tpu.memory_space<vmem>>, vector<1x32xf32>
    tpu.vector_store %arg7[%16, %c0_6], %15 {strides = array<i32>} : memref<8x32xf32, #tpu.memory_space<vmem>>, vector<1x32xf32>,
    %c1_i32_7 = arith.constant 1 : i32
    %18 = arith.addi %8, %c1_i32_7 : i32
    %c8_i32_8 = arith.constant 8 : i32
    %19 = arith.muli %1, %c8_i32_8 : i32
    %20 = arith.addi %19, %18 : i32
    %21 = arith.index_cast %20 : i32 to index
    %22 = memref.load %arg2[%21] : memref<8xi32, #tpu.memory_space<smem>>
    %23 = arith.index_cast %22 : i32 to index
    %c0_9 = arith.constant 0 : index
    %24 = vector.load %arg6[%23, %c0_9] : memref<16x32xf32, #tpu.memory_space<vmem>>, vector<1x32xf32>
    %25 = arith.index_cast %18 : i32 to index
    %c0_10 = arith.constant 0 : index
    %26 = vector.load %arg7[%25, %c0_10] : memref<8x32xf32, #tpu.memory_space<vmem>>, vector<1x32xf32>
    tpu.vector_store %arg7[%25, %c0_10], %24 {strides = array<i32>} : memref<8x32xf32, #tpu.memory_space<vmem>>, vector<1x32xf32>,
    %c2_i32 = arith.constant 2 : i32
    %27 = arith.addi %8, %c2_i32 : i32
    %c8_i32_11 = arith.constant 8 : i32
    %28 = arith.muli %1, %c8_i32_11 : i32
    %29 = arith.addi %28, %27 : i32
    %30 = arith.index_cast %29 : i32 to index
    %31 = memref.load %arg2[%30] : memref<8xi32, #tpu.memory_space<smem>>
    %32 = arith.index_cast %31 : i32 to index
    %c0_12 = arith.constant 0 : index
    %33 = vector.load %arg6[%32, %c0_12] : memref<16x32xf32, #tpu.memory_space<vmem>>, vector<1x32xf32>
    %34 = arith.index_cast %27 : i32 to index
    %c0_13 = arith.constant 0 : index
    %35 = vector.load %arg7[%34, %c0_13] : memref<8x32xf32, #tpu.memory_space<vmem>>, vector<1x32xf32>
    tpu.vector_store %arg7[%34, %c0_13], %33 {strides = array<i32>} : memref<8x32xf32, #tpu.memory_space<vmem>>, vector<1x32xf32>,
    %c3_i32 = arith.constant 3 : i32
    %36 = arith.addi %8, %c3_i32 : i32
    %c8_i32_14 = arith.constant 8 : i32
    %37 = arith.muli %1, %c8_i32_14 : i32
    %38 = arith.addi %37, %36 : i32
    %39 = arith.index_cast %38 : i32 to index
    %40 = memref.load %arg2[%39] : memref<8xi32, #tpu.memory_space<smem>>
    %41 = arith.index_cast %40 : i32 to index
    %c0_15 = arith.constant 0 : index
    %42 = vector.load %arg6[%41, %c0_15] : memref<16x32xf32, #tpu.memory_space<vmem>>, vector<1x32xf32>
    %43 = arith.index_cast %36 : i32 to index
    %c0_16 = arith.constant 0 : index
    %44 = vector.load %arg7[%43, %c0_16] : memref<8x32xf32, #tpu.memory_space<vmem>>, vector<1x32xf32>
    tpu.vector_store %arg7[%43, %c0_16], %42 {strides = array<i32>} : memref<8x32xf32, #tpu.memory_space<vmem>>, vector<1x32xf32>,
    %c4_i32 = arith.constant 4 : i32
    %45 = arith.addi %8, %c4_i32 : i32
    %c8_i32_17 = arith.constant 8 : i32
    %46 = arith.muli %1, %c8_i32_17 : i32
    %47 = arith.addi %46, %45 : i32
    %48 = arith.index_cast %47 : i32 to index
    %49 = memref.load %arg2[%48] : memref<8xi32, #tpu.memory_space<smem>>
    %50 = arith.index_cast %49 : i32 to index
    %c0_18 = arith.constant 0 : index
    %51 = vector.load %arg6[%50, %c0_18] : memref<16x32xf32, #tpu.memory_space<vmem>>, vector<1x32xf32>
    %52 = arith.index_cast %45 : i32 to index
    %c0_19 = arith.constant 0 : index
    %53 = vector.load %arg7[%52, %c0_19] : memref<8x32xf32, #tpu.memory_space<vmem>>, vector<1x32xf32>
    tpu.vector_store %arg7[%52, %c0_19], %51 {strides = array<i32>} : memref<8x32xf32, #tpu.memory_space<vmem>>, vector<1x32xf32>,
    %c5_i32 = arith.constant 5 : i32
    %54 = arith.addi %8, %c5_i32 : i32
    %c8_i32_20 = arith.constant 8 : i32
    %55 = arith.muli %1, %c8_i32_20 : i32
    %56 = arith.addi %55, %54 : i32
    %57 = arith.index_cast %56 : i32 to index
    %58 = memref.load %arg2[%57] : memref<8xi32, #tpu.memory_space<smem>>
    %59 = arith.index_cast %58 : i32 to index
    %c0_21 = arith.constant 0 : index
    %60 = vector.load %arg6[%59, %c0_21] : memref<16x32xf32, #tpu.memory_space<vmem>>, vector<1x32xf32>
    %61 = arith.index_cast %54 : i32 to index
    %c0_22 = arith.constant 0 : index
    %62 = vector.load %arg7[%61, %c0_22] : memref<8x32xf32, #tpu.memory_space<vmem>>, vector<1x32xf32>
    tpu.vector_store %arg7[%61, %c0_22], %60 {strides = array<i32>} : memref<8x32xf32, #tpu.memory_space<vmem>>, vector<1x32xf32>,
    %c6_i32 = arith.constant 6 : i32
    %63 = arith.addi %8, %c6_i32 : i32
    %c8_i32_23 = arith.constant 8 : i32
    %64 = arith.muli %1, %c8_i32_23 : i32
    %65 = arith.addi %64, %63 : i32
    %66 = arith.index_cast %65 : i32 to index
    %67 = memref.load %arg2[%66] : memref<8xi32, #tpu.memory_space<smem>>
    %68 = arith.index_cast %67 : i32 to index
    %c0_24 = arith.constant 0 : index
    %69 = vector.load %arg6[%68, %c0_24] : memref<16x32xf32, #tpu.memory_space<vmem>>, vector<1x32xf32>
    %70 = arith.index_cast %63 : i32 to index
    %c0_25 = arith.constant 0 : index
    %71 = vector.load %arg7[%70, %c0_25] : memref<8x32xf32, #tpu.memory_space<vmem>>, vector<1x32xf32>
    tpu.vector_store %arg7[%70, %c0_25], %69 {strides = array<i32>} : memref<8x32xf32, #tpu.memory_space<vmem>>, vector<1x32xf32>,
    %c7_i32 = arith.constant 7 : i32
    %72 = arith.addi %8, %c7_i32 : i32
    %c8_i32_26 = arith.constant 8 : i32
    %73 = arith.muli %1, %c8_i32_26 : i32
    %74 = arith.addi %73, %72 : i32
    %75 = arith.index_cast %74 : i32 to index
    %76 = memref.load %arg2[%75] : memref<8xi32, #tpu.memory_space<smem>>
    %77 = arith.index_cast %76 : i32 to index
    %c0_27 = arith.constant 0 : index
    %78 = vector.load %arg6[%77, %c0_27] : memref<16x32xf32, #tpu.memory_space<vmem>>, vector<1x32xf32>
    %79 = arith.index_cast %72 : i32 to index
    %c0_28 = arith.constant 0 : index
    %80 = vector.load %arg7[%79, %c0_28] : memref<8x32xf32, #tpu.memory_space<vmem>>, vector<1x32xf32>
    tpu.vector_store %arg7[%79, %c0_28], %78 {strides = array<i32>} : memref<8x32xf32, #tpu.memory_space<vmem>>, vector<1x32xf32>,
    %c1_i32_29 = arith.constant 1 : i32
    %c0_30 = arith.constant 0 : index
    %c0_31 = arith.constant 0 : index
    %81 = vector.load %arg3[%c0_30, %c0_31] : memref<8x32xf32, #tpu.memory_space<vmem>>, vector<8x32xf32>
    %c0_32 = arith.constant 0 : index
    %c0_33 = arith.constant 0 : index
    %82 = vector.load %arg7[%c0_32, %c0_33] : memref<8x32xf32, #tpu.memory_space<vmem>>, vector<8x32xf32>
    %83 = arith.subf %81, %82 : vector<8x32xf32>
    %84 = arith.mulf %83, %83 : vector<8x32xf32>
    %c0_34 = arith.constant 0 : index
    %c0_35 = arith.constant 0 : index
    %85 = vector.load %arg8[%c0_34, %c0_35] : memref<8x32xf32, #tpu.memory_space<vmem>>, vector<8x32xf32>
    %86 = arith.addf %85, %84 : vector<8x32xf32>
    %c0_36 = arith.constant 0 : index
    %c0_37 = arith.constant 0 : index
    %87 = vector.load %arg8[%c0_36, %c0_37] : memref<8x32xf32, #tpu.memory_space<vmem>>, vector<8x32xf32>
    tpu.vector_store %arg8[%c0_36, %c0_37], %86 {strides = array<i32>} : memref<8x32xf32, #tpu.memory_space<vmem>>, vector<8x32xf32>,
    %c0_i32_38 = arith.constant 0 : i32
    %88 = arith.cmpi eq, %arg1, %c0_i32_38 : i32
    %89 = arith.extui %88 : i1 to i32
    %c0_i32_39 = arith.constant 0 : i32
    %90 = arith.cmpi ne, %89, %c0_i32_39 : i32
    scf.if %90 {
      %c0_40 = arith.constant 0 : index
      %c0_41 = arith.constant 0 : index
      %91 = vector.load %arg8[%c0_40, %c0_41] : memref<8x32xf32, #tpu.memory_space<vmem>>, vector<8x32xf32>
      %92 = vector.shape_cast %91 : vector<8x32xf32> to vector<1x8x32xf32>
      %cst = arith.constant dense<0.000000e+00> : vector<1xf32>
      %93 = vector.multi_reduction <add>, %92, %cst [1, 2] : vector<1x8x32xf32> to vector<1xf32>
      %94 = vector.shape_cast %93 : vector<1xf32> to vector<1x1x1xf32>
      %95 = vector.extract %94[0, 0, 0] : f32 from vector<1x1x1xf32>
      %96 = vector.broadcast %95 : f32 to vector<1x1xf32>
      %97 = vector.shape_cast %96 : vector<1x1xf32> to vector<1x1x1xf32>
      %c0_42 = arith.constant 0 : index
      %c0_43 = arith.constant 0 : index
      %c0_44 = arith.constant 0 : index
      %98 = vector.load %arg5[%c0_42, %c0_43, %c0_44] : memref<1x1x1xf32, #tpu.memory_space<vmem>>, vector<1x1x1xf32>
      tpu.vector_store %arg5[%c0_42, %c0_43, %c0_44], %97 {strides = array<i32>} : memref<1x1x1xf32, #tpu.memory_space<vmem>>, vector<1x1x1xf32>,
    } else {
    }
    return
  }
  func.func @transform_0(%arg0: i32, %arg1: i32, %arg2: memref<8xi32, #tpu.memory_space<smem>>) -> (i32, i32) {
    %c1_i32 = arith.constant 1 : i32
    %0 = arith.muli %arg0, %c1_i32 : i32
    %1 = arith.addi %0, %arg1 : i32
    %c0_i32 = arith.constant 0 : i32
    %c0_i32_0 = arith.constant 0 : i32
    return %1, %c0_i32 : i32, i32
  }
  func.func @transform_2(%arg0: i32, %arg1: i32, %arg2: memref<8xi32, #tpu.memory_space<smem>>) -> (i32, i32, i32) {
    %c0_i32 = arith.constant 0 : i32
    %c0_i32_0 = arith.constant 0 : i32
    %c0_i32_1 = arith.constant 0 : i32
    return %arg0, %c0_i32, %c0_i32_0 : i32, i32, i32
  }
}

</mosaic_0001>

<bundles_post_ra>
// kernel: tpu_custom_call.1
= control target key start
LH: loop header
LB: loop body
LE: loop exit
PB: predicated region body
PF: predicated region fallthrough
CT: control target
= control target key end

     0   :  { %s286_s15 = smov [#allocation7]   ;;  %s334_s0 = inlined_call_operand.hbm [shape: s32[8], index: 0, kind: input, shape index: {}]   ;;  %s335_s1 = inlined_call_operand.hbm [shape: f32[8,32], index: 1, kind: input, shape index: {}]   ;;  %s336_s2 = inlined_call_operand.hbm [shape: f32[16,32], index: 2, kind: input, shape index: {}]   ;;  %s337_s3 = inlined_call_operand.hbm [shape: f32[1,1,1], index: 3, kind: output, shape index: {}]  }
   0x1   :  { %s9_s14 = sshll.u32 %s334_s0, 4  ;;  %s10_s14 = int_to_ptr.hbm [resolvable:$true] %s9_s14 }
   0x2   :  { %12 = dma.hbm_to_smem %s10_s14, 16, %s286_s15, [#allocation6] }
   0x3   :  { %278 = dma.done.wait [#allocation6], 16 }
   0x4   :  { %279 = vsyncadd [#allocation6], 4294967280 }
   0x5   :  { %15 = sfence }
   0x6   :  { %16 = vsyncpa [#allocation9], 0 }
   0x7   :  { %17 = vsyncpa [#allocation10], 0  ;;  %s26_s18 = sshll.u32 %s335_s1, 4  ;;  %s287_s19 = smov [#allocation8]   ;;  %s27_s18 = int_to_ptr.hbm [resolvable:$true] %s26_s18 }
   0x8   :  { %s28_s20 = sshll.u32 %s287_s19, 4  ;;  %s29_s20 = int_to_ptr.vmem [resolvable:$true] %s28_s20 }
   0x9   :  { %31 = dma.hbm_to_vmem [thread:$0]  %s27_s18, 128, %s29_s20, [#allocation9]  }
   0xa   :  { %280 = dma.done.wait [#allocation9], 128  }
   0xb   :  { %281 = vsyncadd [#allocation9], 4294967168  ;;  %vm42_vm0 = vcmask 261120   ;;  %s51_s22 = sshll.u32 %s336_s2, 4  ;;  %v288_v0 = vmov 0.0   ;;  %s289_s23 = smov [#allocation2]   ;;  %s52_s22 = int_to_ptr.hbm [resolvable:$true] %s51_s22 }
   0xc   :  { %43 = vst.msk [vmem:[#allocation4] sm:$0xff] %vm42_vm0, %v288_v0  ;;  %s53_s24 = sshll.u32 %s289_s23, 4  ;;  %s54_s24 = int_to_ptr.vmem [resolvable:$true] %s53_s24 }
   0xd   :  { %56 = dma.hbm_to_vmem [thread:$0]  %s52_s22, 256, %s54_s24, [#allocation5] }
   0xe   :  { %282 = dma.done.wait [#allocation5], 256 }
   0xf   :  { %283 = vsyncadd [#allocation5], 4294967040  ;;  %s62_s1 = sld [smem:[#allocation7]]  ;;  %vm65_vm1 = vcmask 253952   ;;  %v116_v9 = vld [vmem:[#allocation8] sm:$0xff]  ;;  %s290_s12 = smov [#allocation11]  }
  0x10   :  { %s179_s25 = sld [smem:[#allocation7 + $0x1]]  ;;  %s146_s13 = sshll.u32 %s290_s12, 4  ;;  %vm139_vm2 = vcmask 0   ;;  %s147_s13 = int_to_ptr.vmem [resolvable:$true] %s146_s13 }
  0x11   :  { %s180_s26 = sld [smem:[#allocation7 + $0x2]]  ;;  %s148_s16 = sshll.u32 %s337_s3, 4  ;;  %s149_s16 = int_to_ptr.hbm [resolvable:$true] %s148_s16 }
  0x12   :  { %s181_s27 = sld [smem:[#allocation7 + $0x3]] }
  0x13   :  { %s182_s28 = sld [smem:[#allocation7 + $0x4]]  ;;  %v120_v12 = vld [vmem:[#allocation4] sm:$0xff] }
  0x14   :  { %s183_s29 = sld [smem:[#allocation7 + $0x5]] }
  0x15   :  { %s184_s30 = sld [smem:[#allocation7 + $0x6]]  ;;  %s63_s4 = scalar_lea.vmem [#allocation2], %s62_s1 }
  0x16   :  { %v64_v1 = vld [vmem:[%s63_s4] sm:$0x1]  ;;  %s185_s2 = sld [smem:[#allocation7 + $0x7]]  ;;  %s70_s5 = scalar_lea.vmem [#allocation2], %s179_s25 }
  0x17   :  { %66 = vst.msk [vmem:[#allocation3] sm:$0x1] %vm65_vm1, %v64_v1  ;;  %v71_v2 = vld [vmem:[%s70_s5] sm:$0x1]  ;;  %s77_s6 = scalar_lea.vmem [#allocation2], %s180_s26 }
  0x18   :  { %73 = vst.msk [vmem:[#allocation3 + $0x1] sm:$0x1] %vm65_vm1, %v71_v2  ;;  %v78_v3 = vld [vmem:[%s77_s6] sm:$0x1]  ;;  %s84_s7 = scalar_lea.vmem [#allocation2], %s181_s27 }
  0x19   :  { %80 = vst.msk [vmem:[#allocation3 + $0x2] sm:$0x1] %vm65_vm1, %v78_v3  ;;  %v85_v4 = vld [vmem:[%s84_s7] sm:$0x1]  ;;  %s91_s8 = scalar_lea.vmem [#allocation2], %s182_s28 }
  0x1a   :  { %87 = vst.msk [vmem:[#allocation3 + $0x3] sm:$0x1] %vm65_vm1, %v85_v4  ;;  %v92_v5 = vld [vmem:[%s91_s8] sm:$0x1]  ;;  %s98_s9 = scalar_lea.vmem [#allocation2], %s183_s29 }
  0x1b   :  { %94 = vst.msk [vmem:[#allocation3 + $0x4] sm:$0x1] %vm65_vm1, %v92_v5  ;;  %v99_v6 = vld [vmem:[%s98_s9] sm:$0x1]  ;;  %s105_s10 = scalar_lea.vmem [#allocation2], %s184_s30 }
  0x1c   :  { %101 = vst.msk [vmem:[#allocation3 + $0x5] sm:$0x1] %vm65_vm1, %v99_v6  ;;  %v106_v7 = vld [vmem:[%s105_s10] sm:$0x1]  ;;  %s112_s11 = scalar_lea.vmem [#allocation2], %s185_s2 }
  0x1d   :  { %108 = vst.msk [vmem:[#allocation3 + $0x6] sm:$0x1] %vm65_vm1, %v106_v7  ;;  %v113_v8 = vld [vmem:[%s112_s11] sm:$0x1] }
  0x1e   :  { %115 = vst.msk [vmem:[#allocation3 + $0x7] sm:$0x1] %vm65_vm1, %v113_v8 }
  0x25   :  { %v117_v10 = vld [vmem:[#allocation3] sm:$0xff] }
  0x26   :  { %v118_v11 = vsub.f32 %v116_v9, %v117_v10 }
  0x28   :  { %v119_v13 = vmul.f32 %v118_v11, %v118_v11 }
  0x2a   :  { %v121_v14 = vadd.f32 %v120_v12, %v119_v13 }
  0x2c   :  { %123 = vst.msk [vmem:[#allocation4] sm:$0xff] %vm42_vm0, %v121_v14 }
  0x33   :  { %v127_v15 = vld [vmem:[#allocation4] sm:$0xff] }
  0x34   :  { %v128_v16 = vsel %vm42_vm0, %v127_v15, 0.0 }
  0x35   :  { %129 = vadd.xlane.f32.xlu0 %v128_v16 }
  0xa8   :  { %v130_v17 = vpop.xlane.xlu0 %129 }
  0xa9   :  { %v131_v18 = vrot.slane %v130_v17, 4 }
  0xab   :  { %v132_v19 = vadd.f32 %v131_v18, %v130_v17 }
  0xad   :  { %v133_v20 = vrot.slane %v132_v19, 2 }
  0xaf   :  { %v134_v21 = vadd.f32 %v133_v20, %v132_v19 }
  0xb1   :  { %v135_v22 = vrot.slane %v134_v21, 1 }
  0xb3   :  { %v136_v23 = vadd.f32 %v135_v22, %v134_v21 }
  0xb5   :  { %187 = vpush %v136_v23 }
  0xe6   :  { %s188_s17 = spop %187 }
  0xe7   :  { %v138_v24 = vstv %s188_s17 }
  0xe8   :  { %140 = vst.msk [vmem:[#allocation11] sm:$0x1] %vm139_vm2, %v138_v24 }
  0xe9   :  { %151 = dma.vmem_to_hbm [thread:$0]  %s147_s13, 16, %s149_s16, [#allocation10]  }
  0xea   :  { %284 = dma.done.wait [#allocation10], 16  }
  0xeb   :  { %285 = vsyncadd [#allocation10], 4294967280 }
  0xec   :  { %156 = vsyncpa [#allocation9], 1 }
  0xed   :  { %157 = vsyncpa [#allocation10], 1 }
  0xee   :  { %158 = vsyncmov [#allocation5] }
  0xf1   :  { %s159_s18 = vpop.sfrf %158 }
  0xf2   :  { %p186_p0 = scmp.ne.s32.totalorder %s159_s18, 0 }
  0xf4   :  { %163 = shalt.err (%p186_p0)  }

</bundles_post_ra>
